<compile_context>
chip_gen: v5e
topology: v5e:2x2
jax: 0.10.0
libtpu: 0.0.40
codegen_flags: <defaults>
</compile_context>

<pallas_src>
from functools import partial

import jax
import jax.numpy as jnp
from jax.experimental import pallas as pl
from jax.experimental.pallas import tpu as pltpu


# ---------------------------------------------------------------------------
# Pallas kernel: fused (im2col-matmul conv) + folded-BN bias + ReLU
# ---------------------------------------------------------------------------
def conv_bn_relu_kernel(w_ref, p_ref, bias_ref, o_ref):
    # w_ref:    (Cout, Kp)  bf16  conv weight with BN scale pre-folded
    # p_ref:    (Kp,  TM)   bf16  im2col patches (transposed: lane dim = M tile)
    # bias_ref: (Cout, 1)   f32   folded BN bias
    # o_ref:    (Cout, TM)  bf16  lane-dense output tile
    acc = jnp.dot(w_ref[...], p_ref[...], preferred_element_type=jnp.float32)
    y = acc + bias_ref[...]                      # lane-broadcast of (Cout, 1)
    o_ref[...] = jnp.maximum(y, 0.0).astype(o_ref.dtype)


# ---------------------------------------------------------------------------
# Plain-JAX glue: transposed im2col, (N,H,W,C) -> (K, M)
#   K index = (i*kw + j)*Cin + c   (tap-major, channel-minor)
#   M index = n*Ho*Wo + ho*Wo + wo
# ---------------------------------------------------------------------------
def _im2col_T_nhwc(x_nhwc, kh, kw, stride):
    N, H, W, C = x_nhwc.shape
    Ho = (H - kh) // stride + 1
    Wo = (W - kw) // stride + 1
    taps = jnp.stack(
        [x_nhwc[:, i:i + stride * Ho:stride, j:j + stride * Wo:stride, :]
         for i in range(kh) for j in range(kw)],
        axis=0)                                            # (kh*kw, N, Ho, Wo, C)
    pT = jnp.transpose(taps, (0, 4, 1, 2, 3)).reshape(kh * kw * C, N * Ho * Wo)
    return pT, Ho, Wo


# ---------------------------------------------------------------------------
# Stem: Conv2d(3, 32, 3, stride=2, bias=False) + BatchNorm + ReLU
# NOTE: eps=1e-3 matches InceptionV4's BasicConv2d (not torch's BN default 1e-5).
# ---------------------------------------------------------------------------
@partial(jax.jit, static_argnames=("stride", "tm"))
def stem_conv_bn_relu(x_nchw, w_oihw, gamma, beta, mean, var,
                      eps=1e-3, stride=2, tm=8192):
    """x_nchw: (N, Cin, H, W) -> (N, Cout, Ho, Wo)  (NCHW, matching PyTorch)."""
    N, Cin, H, W = x_nchw.shape
    Cout, _, kh, kw = w_oihw.shape
    K = kh * kw * Cin

    # Glue (fused into this jit): cast to bf16 BEFORE im2col so all glue
    # intermediates (9-tap stack / transpose / reshape) move at half the bytes.
    x_nhwc = jnp.transpose(x_nchw, (0, 2, 3, 1)).astype(jnp.bfloat16)
    pT, Ho, Wo = _im2col_T_nhwc(x_nhwc, kh, kw, stride)    # (K, M) bf16
    M = N * Ho * Wo

    # Fold BN: scale into the weights (bf16), keep bias as a separate f32 add.
    scale = gamma / jnp.sqrt(var + eps)                    # (Cout,)
    bias = (beta - mean * scale).reshape(Cout, 1).astype(jnp.float32)
    # (Cout, Cin, kh, kw) -> (Cout, kh, kw, Cin) -> (Cout, K); rows match pT.
    w_t = jnp.transpose(w_oihw, (0, 2, 3, 1)).reshape(Cout, K)
    w_t = (w_t * scale[:, None]).astype(jnp.bfloat16)

    # Pad only the contraction dim K -> multiple of 16 (bf16 sublane packing);
    # the padded rows MUST be zero (they feed the dot).  No M padding: the
    # ragged last block is handled by Pallas' masked block DMAs.
    Kp = pl.cdiv(K, 16) * 16
    pT = jnp.pad(pT, ((0, Kp - K), (0, 0)))
    w_t = jnp.pad(w_t, ((0, 0), (0, Kp - K)))

    # M tile: as large as requested, but don't over-pad tiny problems.
    tm = max(128, min(tm, pl.cdiv(M, 128) * 128))
    assert tm % 128 == 0
    n_m = pl.cdiv(M, tm)
    # v7x megacore balance: prefer an even grid-step count so the ("parallel",)
    # axis splits evenly across the chip's 2 TensorCores.
    if n_m > 1 and n_m % 2 == 1:
        tm2 = pl.cdiv(pl.cdiv(M, n_m + 1), 128) * 128
        if tm2 >= 128 and pl.cdiv(M, tm2) % 2 == 0:
            tm, n_m = tm2, pl.cdiv(M, tm2)

    out_T = pl.pallas_call(
        conv_bn_relu_kernel,
        out_shape=jax.ShapeDtypeStruct((Cout, M), jnp.bfloat16),
        grid=(n_m,),
        in_specs=[
            pl.BlockSpec((Cout, Kp), lambda i: (0, 0)),    # weights (resident)
            pl.BlockSpec((Kp, tm), lambda i: (0, i)),      # patches, tiled over M
            pl.BlockSpec((Cout, 1), lambda i: (0, 0)),     # folded BN bias (f32)
        ],
        out_specs=pl.BlockSpec((Cout, tm), lambda i: (0, i)),
        compiler_params=pltpu.CompilerParams(
            dimension_semantics=("parallel",),
            vmem_limit_bytes=32 * 1024 * 1024),
    )(w_t, pT, bias)

    out = out_T.reshape(Cout, N, Ho, Wo)                   # channel-major
    return jnp.transpose(out, (1, 0, 2, 3))                # back to NCHW


# ---------------------------------------------------------------------------
# Module wrapper (semantics-exact)
# ---------------------------------------------------------------------------
class NASNetPallas:
    """Mirror of the PyTorch NASNet module."""

    def __init__(self, key):
        self.name = "NASNET"
        # Deterministic init of the inceptionv4 stem-conv parameters.
        k1, k2, k3, k4, k5 = jax.random.split(key, 5)
        Cout, Cin, kh, kw = 32, 3, 3, 3
        self.w = jax.random.normal(k1, (Cout, Cin, kh, kw), jnp.float32) * 0.1
        self.gamma = 1.0 + 0.1 * jax.random.normal(k2, (Cout,), jnp.float32)
        self.beta = 0.1 * jax.random.normal(k3, (Cout,), jnp.float32)
        self.mean = 0.1 * jax.random.normal(k4, (Cout,), jnp.float32)
        self.var = jnp.abs(jax.random.normal(k5, (Cout,), jnp.float32)) + 0.5

    def stem(self, x_nchw, tm=8192):
        return stem_conv_bn_relu(x_nchw, self.w, self.gamma, self.beta,
                                 self.mean, self.var, tm=tm)

    def forward(self, x):
        # Exact reproduction of the reference forward: body is `pass` -> None.
        pass


# ---------------------------------------------------------------------------
# References (plain JAX) + demo
# ---------------------------------------------------------------------------
def _reference_bf16(x_nchw, w, gamma, beta, mean, var, eps=1e-3):
    """Same bf16-quantized operands as the kernel (accumulation order and the
    final bf16 output cast are the only differences)."""
    scale = gamma / jnp.sqrt(var + eps)
    bias = beta - mean * scale
    w_s = (w * scale[:, None, None, None]).astype(jnp.bfloat16)
    y = jax.lax.conv_general_dilated(
        x_nchw.astype(jnp.bfloat16), w_s, window_strides=(2, 2), padding="VALID",
        dimension_numbers=("NCHW", "OIHW", "NCHW"),
        preferred_element_type=jnp.float32)
    return jnp.maximum(y + bias[None, :, None, None], 0.0)


def _reference_f32(x_nchw, w, gamma, beta, mean, var, eps=1e-3):
    y = jax.lax.conv_general_dilated(
        x_nchw, w, window_strides=(2, 2), padding="VALID",
        dimension_numbers=("NCHW", "OIHW", "NCHW"))
    scale = gamma / jnp.sqrt(var + eps)
    bias = beta - mean * scale
    y = y * scale[None, :, None, None] + bias[None, :, None, None]
    return jnp.maximum(y, 0.0)


if __name__ == "__main__":
    key = jax.random.PRNGKey(0)
    kx, kp = jax.random.split(key)

    # Small NCHW RGB input consistent with inceptionv4's expected input.
    x = jax.random.normal(kx, (2, 3, 32, 32), jnp.float32)

    net = NASNetPallas(kp)

    # Exact forward semantics: returns None (body is `pass`).
    assert net.forward(x) is None

    ref_b = _reference_bf16(x, net.w, net.gamma, net.beta, net.mean, net.var)
    ref_f = _reference_f32(x, net.w, net.gamma, net.beta, net.mean, net.var)

    # (a) tm=128: multi-step pipelined grid with a ragged last block
    #     (M = 2*15*15 = 450 -> 3 full tiles of 128 + one 66-wide tail).
    out_small = jax.block_until_ready(net.stem(x, tm=128))
    assert out_small.shape == (2, 32, 15, 15), out_small.shape

    # (b) default large-tile path (single ragged block for this tiny demo).
    out_big = jax.block_until_ready(net.stem(x))
    assert out_big.shape == (2, 32, 15, 15), out_big.shape

    for out in (out_small, out_big):
        out32 = out.astype(jnp.float32)
        # Tight check vs an XLA conv on the SAME bf16-quantized operands
        # (tolerance widened slightly for the bf16 output cast).
        assert jnp.allclose(out32, ref_b, atol=1e-2, rtol=1e-2), \
            "mismatch vs bf16 reference"
        # Loose check vs full-f32 math (bounds bf16 quantization error).
        assert jnp.allclose(out32, ref_f, atol=5e-2, rtol=5e-2), \
            "mismatch vs f32 reference"

    print("KERNEL_OK")
</pallas_src>

<mosaic_0001>
module attributes {stable_mosaic.version = 11 : i64} {
  func.func @conv_bn_relu_kernel(%arg0: i32, %arg1: memref<32x32xbf16, #tpu.memory_space<vmem>>, %arg2: memref<32x128xbf16, #tpu.memory_space<vmem>>, %arg3: memref<32x1xf32, #tpu.memory_space<vmem>>, %arg4: memref<32x128xbf16, #tpu.memory_space<vmem>>) attributes {dimension_semantics = [#tpu.dimension_semantics<parallel>], iteration_bounds = array<i64: 4>, scalar_prefetch = 0 : i64, scratch_operands = 0 : i64, tpu.core_type = #tpu.core_type<tc>, window_params = [{pipeline_mode = #tpu.pipeline_mode<synchronous>, transform_indices = @transform_0, window_bounds = array<i64: 32, 32>}, {transform_indices = @transform_1, window_bounds = array<i64: 32, 128>}, {pipeline_mode = #tpu.pipeline_mode<synchronous>, transform_indices = @transform_2, window_bounds = array<i64: 32, 1>}, {transform_indices = @transform_3, window_bounds = array<i64: 32, 128>}]} {
    %c0 = arith.constant 0 : index
    %c0_0 = arith.constant 0 : index
    %0 = vector.load %arg1[%c0, %c0_0] : memref<32x32xbf16, #tpu.memory_space<vmem>>, vector<32x32xbf16>
    %c0_1 = arith.constant 0 : index
    %c0_2 = arith.constant 0 : index
    %1 = vector.load %arg2[%c0_1, %c0_2] : memref<32x128xbf16, #tpu.memory_space<vmem>>, vector<32x128xbf16>
    %cst = arith.constant dense<0.000000e+00> : vector<32x128xf32>
    %2 = tpu.matmul %0, %1, %cst {dimension_numbers = #tpu.dot_dimension_numbers<[1], [0], [0], [1], [0, 0, 1, 1], [], []>} : vector<32x32xbf16>, vector<32x128xbf16>, vector<32x128xf32> -> vector<32x128xf32>
    %c0_3 = arith.constant 0 : index
    %c0_4 = arith.constant 0 : index
    %3 = vector.load %arg3[%c0_3, %c0_4] : memref<32x1xf32, #tpu.memory_space<vmem>>, vector<32x1xf32>
    %4 = vector.broadcast %3 : vector<32x1xf32> to vector<32x128xf32>
    %5 = arith.addf %2, %4 : vector<32x128xf32>
    %cst_5 = arith.constant 0.000000e+00 : f32
    %6 = vector.broadcast %cst_5 : f32 to vector<32x128xf32>
    %7 = arith.maximumf %5, %6 : vector<32x128xf32>
    %8 = arith.truncf %7 : vector<32x128xf32> to vector<32x128xbf16>
    %c0_6 = arith.constant 0 : index
    %c0_7 = arith.constant 0 : index
    %9 = vector.load %arg4[%c0_6, %c0_7] : memref<32x128xbf16, #tpu.memory_space<vmem>>, vector<32x128xbf16>
    tpu.vector_store %arg4[%c0_6, %c0_7], %8 {strides = array<i32>} : memref<32x128xbf16, #tpu.memory_space<vmem>>, vector<32x128xbf16>,
    return
  }
  func.func @transform_0(%arg0: i32) -> (i32, i32) {
    %c0_i32 = arith.constant 0 : i32
    %c0_i32_0 = arith.constant 0 : i32
    %c0_i32_1 = arith.constant 0 : i32
    return %c0_i32, %c0_i32_0 : i32, i32
  }
  func.func @transform_1(%arg0: i32) -> (i32, i32) {
    %c0_i32 = arith.constant 0 : i32
    %c0_i32_0 = arith.constant 0 : i32
    return %c0_i32, %arg0 : i32, i32
  }
  func.func @transform_2(%arg0: i32) -> (i32, i32) {
    %c0_i32 = arith.constant 0 : i32
    %c0_i32_0 = arith.constant 0 : i32
    %c0_i32_1 = arith.constant 0 : i32
    return %c0_i32, %c0_i32_0 : i32, i32
  }
  func.func @transform_3(%arg0: i32) -> (i32, i32) {
    %c0_i32 = arith.constant 0 : i32
    %c0_i32_0 = arith.constant 0 : i32
    return %c0_i32, %arg0 : i32, i32
  }
}

</mosaic_0001>

<bundles_post_ra>
// kernel: stem_conv_bn_relu.1
= control target key start
LH: loop header
LB: loop body
LE: loop exit
PB: predicated region body
PF: predicated region fallthrough
CT: control target
= control target key end

     0   :  { %s551_s12 = smov 0   ;;  %s553_s13 = smov 0   ;;  %s633_s0 = inlined_call_operand.vmem [shape: bf16[32,32], index: 0, kind: input, shape index: {}]   ;;  %s634_s1 = inlined_call_operand.vmem [shape: bf16[32,450], index: 1, kind: input, shape index: {}]   ;;  %s635_s2 = inlined_call_operand.vmem [shape: f32[32,1], index: 2, kind: input, shape index: {}]   ;;  %s636_s3 = inlined_call_operand.vmem [shape: bf16[32,450], index: 3, kind: output, shape index: {}]  }
   0x1   :  { %s555_s14 = smov 0  }
   0x2 LB: > { %s431_s15 = sadd.s32 4294967295, %s528_s14   ;;  %s568_s16 = sadd.s32 1, %s528_s14   ;;  %s528_s14 = sphi %s555_s14, %s640_s14   ;;  %s524_s13 = sphi %s553_s13, %s639_s13   ;;  %s520_s12 = sphi %s551_s12, %s638_s12  }
   0x3   : > { %s38_s17 = ssub.s32 %s528_s14, %s568_s16  ;;  %s41_s18 = sadd.s32 1, %s524_s13 }
   0x4   : > { %p39_p0 = scmp.eq.s32.totalorder %s38_s17, 0  ;;  %p48_p1 = scmp.ne.s32.totalorder %s524_s13, %s520_s12 }
   0x5   : > { %p49_p2 = scmp.eq.s32.totalorder %s528_s14, 0  ;;  %p99_p3 = scmp.eq.s32.totalorder %s431_s15, 3 }
   0x6   : > { %s579_s19 = scalar_select %p39_p0, %s524_s13, %s41_s18  }
   0x7   : > { %p50_p4 = por %p49_p2, %p48_p1  ;;  %p581_p5 = por %p99_p3, %p48_p1 }
   0x8   : > { %p434_p6 = scmp.ge.s32.totalorder %s528_s14, 4 }
   0xa   : > { %127 = sbr.rel (%p434_p6) target bundleno = 23 (0x17), region = 24 }
   0xf   : > { %130 = sbr.rel (!%p50_p4) target bundleno = 23 (0x17), region = 28  ;;  %s132_s21 = sand.u32 (%p50_p4), 1, %s524_s13  }
  0x10   : > { %s436_s22 = sshll.u32 (%p50_p4), %s528_s14, 2  ;;  %s435_s23 = sshll.u32 (%p50_p4), %s132_s21, 4 }
  0x11   : > { %s136_s26 = scalar_lea.vmem (%p50_p4), %s634_s1, %s436_s22  ;;  %s134_s27 = scalar_lea.vmem (%p50_p4), [#allocation2], %s435_s23 }
  0x12   : > { %v153_v0 = vld [vmem:[%s136_s26] sm:$0xf] (%p50_p4)  ;;  %v155_v1 = vld [vmem:[%s136_s26 + $0x10] sm:$0xf] (%p50_p4) }
  0x13   : > { %154 = vst [vmem:[%s134_s27] sm:$0xf] (%p50_p4), %v153_v0  ;;  %v157_v2 = vld [vmem:[%s136_s26 + $0x20] sm:$0xf] (%p50_p4)  ;;  %v159_v3 = vld [vmem:[%s136_s26 + $0x30] sm:$0xf] (%p50_p4) }
  0x14   : > { %156 = vst [vmem:[%s134_s27 + $0x4] sm:$0xf] %v155_v1 }
  0x15   : > { %158 = vst [vmem:[%s134_s27 + $0x8] sm:$0xf] %v157_v2 }
  0x16   : > { %160 = vst [vmem:[%s134_s27 + $0xc] sm:$0xf] %v159_v3 }
  0x17 PF: > { %p437_p7 = scmp.ge.s32.totalorder %s528_s14, 1  ;;  %p191_p8 = scmp.lt.s32.totalorder %s528_s14, 5 }
  0x19   : > { %p192_p9 = pnand %p437_p7, %p191_p8 }
  0x1a   : > { %s198_s28 = sand.u32 (!%p192_p9), 1, %s520_s12  }
  0x1b   : > { %195 = sbr.rel (%p192_p9) target bundleno = 195 (0xc3), region = 69  ;;  %s597_s4 = sshll.u32 (!%p192_p9), %s198_s28, 4 }
  0x1c   : > { %s200_s7 = scalar_lea.vmem (!%p192_p9), [#allocation2], %s597_s4  ;;  %s219_s22 = scalar_lea.vmem (!%p192_p9), [#allocation3], %s597_s4 }
  0x20   : > { %v231_v4 = vld [vmem:[%s635_s2 + $0x10] sm:$0xff]  ;;  %v530_v5 = vmov 0   ;;  %v229_v6 = vld [vmem:[%s635_s2] sm:$0xff]  ;;  %v465_v7 = vld [vmem:[%s200_s7 + $0x8] sm:$0xff]  ;;  %vm275_vm0 = vcmask 261120   ;;  %s459_s23 = sshll.u32 (%p581_p5), %s431_s15, 2 }
  0x21   : > { %505 = vset.pattern.permute.xlu1 %v530_v5  ;;  %504 = vset.pattern.permute.xlu0 %v530_v5  ;;  %v464_v8 = vld [vmem:[%s200_s7] sm:$0xff]  ;;  %v232_v9 = vld [vmem:[%s635_s2 + $0x18] sm:$0xff]  ;;  %v230_v10 = vld [vmem:[%s635_s2 + $0x8] sm:$0xff]  ;;  %s321_s26 = scalar_lea.vmem (%p581_p5), %s636_s3, %s459_s23 }
  0x22   : > { %245 = vperm.xlu1 %505, %v231_v4   ;;  %235 = vperm.xlu0 %504, %v229_v6   ;;  %v462_v11 = vld [vmem:[%s633_s0] sm:$0xff]  ;;  %v463_v12 = vld [vmem:[%s633_s0 + $0x8] sm:$0xff] }
  0x23   : > { %288 = vmatpush.bf16.msra.mxu0 %v465_v7  ;;  %477 = vmatpush.bf16.msra.mxu1 %v465_v7 }
  0x27   : > { %289 = vmatpush.bf16.msra.mxu0 %v464_v8  ;;  %478 = vmatpush.bf16.msra.mxu1 %v464_v8 }
  0x2a   : > { %250 = vperm.xlu1 %505, %v232_v9   ;;  %240 = vperm.xlu0 %504, %v230_v10  }
  0x2b   : > { %456 = vmatmul.msk.bf16.vlgmr.msra.gmra.mxu0 %vm275_vm0, %v462_v11  ;;  %457 = vmatmul.msk.bf16.vlgmr.msra.gmra.mxu1 %vm275_vm0, %v463_v12 }
  0x94   : > { %v246_v13 = vpop.permute.xlu1 %245  ;;  %v236_v14 = vpop.permute.xlu0 %235 }
  0x9c   : > { %v251_v17 = vpop.permute.xlu1 %250  ;;  %v241_v18 = vpop.permute.xlu0 %240 }
  0xa8   : > { %v291_v15 = vpop.f32.mrf.mxu0  ;;  %v296_v16 = vpop.f32.mrf.mxu1 }
  0xa9   : > { %v292_v19 = vadd.f32 %v291_v15, %v236_v14  ;;  %v297_v20 = vadd.f32 %v296_v16, %v246_v13 }
  0xab   : > { %v301_v25 = vmax.f32 %v292_v19, 0.0  ;;  %v303_v26 = vmax.f32 %v297_v20, 0.0 }
  0xb0   : > { %v293_v21 = vpop.f32.mrf.mxu0  ;;  %v298_v22 = vpop.f32.mrf.mxu1 }
  0xb1   : > { %v294_v23 = vadd.f32 %v293_v21, %v241_v18  ;;  %v299_v24 = vadd.f32 %v298_v22, %v251_v17 }
  0xb3   : > { %v302_v27 = vmax.f32 %v294_v23, 0.0  ;;  %v304_v28 = vmax.f32 %v299_v24, 0.0 }
  0xb4   : > { %319 = sbr.rel (!%p581_p5) target bundleno = 195 (0xc3), region = 77 }
  0xb5   : > { %v469_v29 = vpack.c.bf16 %v302_v27, %v301_v25  ;;  %v474_v30 = vpack.c.bf16 %v304_v28, %v303_v26 }
  0xb7   : > { %470 = vst [vmem:[%s219_s22] sm:$0xff] %v469_v29  }
  0xb8   : > { %476 = vst [vmem:[%s219_s22 + $0x8] sm:$0xff] %v474_v30  }
  0xbe   : > { %v338_v31 = vld [vmem:[%s219_s22] sm:$0xf]  ;;  %v340_v32 = vld [vmem:[%s219_s22 + $0x4] sm:$0xf] }
  0xbf   : > { %v342_v33 = vld [vmem:[%s219_s22 + $0x8] sm:$0xf]  ;;  %339 = vst [vmem:[%s321_s26] sm:$0xf] %v338_v31  ;;  %v344_v34 = vld [vmem:[%s219_s22 + $0xc] sm:$0xf] }
  0xc0   : > { %341 = vst [vmem:[%s321_s26 + $0x10] sm:$0xf] %v340_v32 }
  0xc1   : > { %343 = vst [vmem:[%s321_s26 + $0x20] sm:$0xf] %v342_v33 }
  0xc2   : > { %345 = vst [vmem:[%s321_s26 + $0x30] sm:$0xf] %v344_v34 }
  0xc3 PF: > { %p10_p10 = scmp.ge.s32.totalorder %s568_s16, 6   ;;  %s638_s12 = smov %s524_s13 }
  0xc4   : > { %s639_s13 = smov %s579_s19  ;;  %s640_s14 = smov %s568_s16 }
  0xc5   :  { %12 = sbr.rel (!%p10_p10) target bundleno = 2 (0x2), region = 149 }

</bundles_post_ra>
